<compile_context>
chip_gen: v7x
topology: tpu7x:2x2x1
jax: 0.10.0
libtpu: 0.0.40
codegen_flags: <defaults>
</compile_context>

<pallas_src>
import jax
import jax.numpy as jnp
from jax import lax
from jax.experimental import pallas as pl
from jax.experimental.pallas import tpu as pltpu


def mlp_kernel(xT_ref, w1T_ref, b1T_ref, w2row_ref, b2_ref, o_ref):
    # xT_ref:    [2,  TILE]  features on sublanes, batch on lanes
    # w1T_ref:   [Hp, 2]     0.5 * w1^T, hidden zero-padded 10 -> Hp=16
    # b1T_ref:   [Hp, 1]     0.5 * b1   (padded rows are 0)
    # w2row_ref: [1,  Hp]    0.5 * w2^T (padded cols are 0)
    # b2_ref:    [1, 1]      b2 + 0.5*sum(w2), scalar in SMEM
    # o_ref:     [1,  TILE]  lane-dense output block
    #
    # fc1 on the (otherwise idle) MXU; only the bias add uses the VPU.
    z = jnp.dot(w1T_ref[...], xT_ref[...],
                preferred_element_type=jnp.float32,
                precision=lax.Precision.HIGHEST) + b1T_ref[...]     # [Hp, TILE]
    # sigmoid folded into the weights -> a single EUP transcendental.
    h = jnp.tanh(z)                                                 # [Hp, TILE]
    # fc2 on the MXU as well; padded hidden columns of w2row are 0, so the
    # padded rows of h contribute exactly 0.
    out = jnp.dot(w2row_ref[...], h,
                  preferred_element_type=jnp.float32,
                  precision=lax.Precision.HIGHEST)                  # [1, TILE]
    o_ref[...] = (out + b2_ref[0, 0]).astype(o_ref.dtype)


@jax.jit
def mynet_forward(x, w1, b1, w2, b2):
    """x: [B, 2]; w1: [2, H]; b1: [1, H]; w2: [H, 1]; b2: [1, 1]  ->  [B, 1]."""
    B, in_f = x.shape
    H = w1.shape[1]
    Hp = ((H + 7) // 8) * 8                      # pad hidden to full sublane groups

    # Tile selection: big lane-aligned blocks (cap 32K lanes so double-buffered
    # I/O + [Hp, tile] f32 intermediates stay ~12 MiB), but aim for >= 2 blocks
    # so v7x's two TensorCores can each take a slice of the batch.
    MAX_TILE = 32768
    tile = min(MAX_TILE, ((max(128, -(-B // 2)) + 127) // 128) * 128)
    n_blocks = -(-B // tile)
    B_pad = n_blocks * tile

    # Fold sigmoid(z) = 0.5*tanh(z/2) + 0.5 into the tiny weights (once, outside
    # the kernel):  y = w2^T sigmoid(w1^T x + b1) + b2
    #                 = (0.5 w2)^T tanh((0.5 w1)^T x + 0.5 b1) + (b2 + 0.5*sum(w2))
    f32 = jnp.float32
    w1T = jnp.zeros((Hp, in_f), f32).at[:H, :].set(0.5 * w1.T.astype(f32))
    b1T = jnp.zeros((Hp, 1), f32).at[:H, :].set(0.5 * b1.astype(f32).reshape(H, 1))
    w2r = jnp.zeros((1, Hp), f32).at[:, :H].set(0.5 * w2.astype(f32).reshape(1, H))
    b2s = jnp.asarray(b2, f32).reshape(1, 1) + 0.5 * jnp.sum(w2.astype(f32))

    # Batch on lanes; the transpose + zero-pad fuse under this jit (one copy),
    # and padded batch columns are zeros so they stay finite and get sliced off.
    xT = jnp.pad(x.astype(f32).T, ((0, 0), (0, B_pad - B)))

    outT = pl.pallas_call(
        mlp_kernel,
        out_shape=jax.ShapeDtypeStruct((1, B_pad), f32),
        grid=(n_blocks,),
        in_specs=[
            pl.BlockSpec((in_f, tile), lambda i: (0, i)),        # x^T tiled over batch
            pl.BlockSpec((Hp, in_f), lambda i: (0, 0)),          # weights stay resident
            pl.BlockSpec((Hp, 1), lambda i: (0, 0)),
            pl.BlockSpec((1, Hp), lambda i: (0, 0)),
            pl.BlockSpec(memory_space=pltpu.MemorySpace.SMEM),   # scalar bias b2
        ],
        out_specs=pl.BlockSpec((1, tile), lambda i: (0, i)),     # lane-dense output
        compiler_params=pltpu.CompilerParams(
            dimension_semantics=("parallel",),
            vmem_limit_bytes=48 * 1024 * 1024,
        ),
    )(xT, w1T, b1T, w2r, b2s)

    return outT[:, :B].reshape(B, 1)


def init_params(key, in_features=2, hidden=10, out_features=1):
    # Deterministic init mimicking PyTorch's default U(-1/sqrt(fan_in), 1/sqrt(fan_in)).
    k1, k2, k3, k4 = jax.random.split(key, 4)
    lim1 = 1.0 / jnp.sqrt(jnp.float32(in_features))
    lim2 = 1.0 / jnp.sqrt(jnp.float32(hidden))
    w1 = jax.random.uniform(k1, (in_features, hidden), jnp.float32, -lim1, lim1)
    b1 = jax.random.uniform(k2, (1, hidden), jnp.float32, -lim1, lim1)
    w2 = jax.random.uniform(k3, (hidden, out_features), jnp.float32, -lim2, lim2)
    b2 = jax.random.uniform(k4, (1, out_features), jnp.float32, -lim2, lim2)
    return w1, b1, w2, b2


if __name__ == "__main__":
    key = jax.random.PRNGKey(0)
    kx, kp = jax.random.split(key)

    # Batch chosen to exercise the multi-block grid path (tile=512, 2 blocks,
    # with 24 padded batch columns); features/hidden/out match the PyTorch
    # module (2 -> 10 -> 1), inputs span the module's training range [0, 3].
    batch = 1000
    x = jax.random.uniform(kx, (batch, 2), jnp.float32, 0.0, 3.0)
    w1, b1, w2, b2 = init_params(kp, in_features=2, hidden=10, out_features=1)

    out = jax.block_until_ready(mynet_forward(x, w1, b1, w2, b2))

    # Plain-JAX reference (same HIGHEST matmul precision as the kernel's dots).
    z = jnp.dot(x, w1, precision=lax.Precision.HIGHEST) + b1
    ref = jnp.dot(jax.nn.sigmoid(z), w2, precision=lax.Precision.HIGHEST) + b2
    assert out.shape == (batch, 1)
    assert jnp.allclose(out, ref, atol=1e-4, rtol=1e-4), float(jnp.max(jnp.abs(out - ref)))

    print("KERNEL_OK")
</pallas_src>

<mosaic_0001>
module attributes {stable_mosaic.version = 11 : i64} {
  func.func @mlp_kernel(%arg0: i32, %arg1: memref<2x512xf32, #tpu.memory_space<vmem>>, %arg2: memref<16x2xf32, #tpu.memory_space<vmem>>, %arg3: memref<16x1xf32, #tpu.memory_space<vmem>>, %arg4: memref<1x16xf32, #tpu.memory_space<vmem>>, %arg5: memref<1x1xf32, #tpu.memory_space<smem>>, %arg6: memref<1x512xf32, #tpu.memory_space<vmem>>) attributes {dimension_semantics = [#tpu.dimension_semantics<parallel>], iteration_bounds = array<i64: 2>, scalar_prefetch = 0 : i64, scratch_operands = 0 : i64, tpu.core_type = #tpu.core_type<tc>, window_params = [{transform_indices = @transform_0, window_bounds = array<i64: 2, 512>}, {pipeline_mode = #tpu.pipeline_mode<synchronous>, transform_indices = @transform_1, window_bounds = array<i64: 16, 2>}, {pipeline_mode = #tpu.pipeline_mode<synchronous>, transform_indices = @transform_2, window_bounds = array<i64: 16, 1>}, {pipeline_mode = #tpu.pipeline_mode<synchronous>, transform_indices = @transform_3, window_bounds = array<i64: 1, 16>}, {transform_indices = @transform_4, window_bounds = array<i64: 1, 1>}, {transform_indices = @transform_5, window_bounds = array<i64: 1, 512>}]} {
    %c0 = arith.constant 0 : index
    %c0_0 = arith.constant 0 : index
    %0 = vector.load %arg2[%c0, %c0_0] : memref<16x2xf32, #tpu.memory_space<vmem>>, vector<16x2xf32>
    %c0_1 = arith.constant 0 : index
    %c0_2 = arith.constant 0 : index
    %1 = vector.load %arg1[%c0_1, %c0_2] : memref<2x512xf32, #tpu.memory_space<vmem>>, vector<2x512xf32>
    %cst = arith.constant dense<0.000000e+00> : vector<16x512xf32>
    %2 = tpu.matmul %0, %1, %cst {dimension_numbers = #tpu.dot_dimension_numbers<[1], [0], [0], [1], [0, 0, 1, 1], [], []>, precision = #tpu.contract_precision<fp32>} : vector<16x2xf32>, vector<2x512xf32>, vector<16x512xf32> -> vector<16x512xf32>
    %c0_3 = arith.constant 0 : index
    %c0_4 = arith.constant 0 : index
    %3 = vector.load %arg3[%c0_3, %c0_4] : memref<16x1xf32, #tpu.memory_space<vmem>>, vector<16x1xf32>
    %4 = vector.broadcast %3 : vector<16x1xf32> to vector<16x512xf32>
    %5 = arith.addf %2, %4 : vector<16x512xf32>
    %6 = math.tanh %5 : vector<16x512xf32>
    %c0_5 = arith.constant 0 : index
    %c0_6 = arith.constant 0 : index
    %7 = vector.load %arg4[%c0_5, %c0_6] : memref<1x16xf32, #tpu.memory_space<vmem>>, vector<1x16xf32>
    %cst_7 = arith.constant dense<0.000000e+00> : vector<1x512xf32>
    %8 = tpu.matmul %7, %6, %cst_7 {dimension_numbers = #tpu.dot_dimension_numbers<[1], [0], [0], [1], [0, 0, 1, 1], [], []>, precision = #tpu.contract_precision<fp32>} : vector<1x16xf32>, vector<16x512xf32>, vector<1x512xf32> -> vector<1x512xf32>
    %c0_8 = arith.constant 0 : index
    %c0_9 = arith.constant 0 : index
    %9 = memref.load %arg5[%c0_8, %c0_9] : memref<1x1xf32, #tpu.memory_space<smem>>
    %10 = vector.broadcast %9 : f32 to vector<1x512xf32>
    %11 = arith.addf %8, %10 : vector<1x512xf32>
    %c0_10 = arith.constant 0 : index
    %c0_11 = arith.constant 0 : index
    %12 = vector.load %arg6[%c0_10, %c0_11] : memref<1x512xf32, #tpu.memory_space<vmem>>, vector<1x512xf32>
    tpu.vector_store %arg6[%c0_10, %c0_11], %11 {strides = array<i32>} : memref<1x512xf32, #tpu.memory_space<vmem>>, vector<1x512xf32>,
    return
  }
  func.func @transform_0(%arg0: i32) -> (i32, i32) {
    %c0_i32 = arith.constant 0 : i32
    %c0_i32_0 = arith.constant 0 : i32
    return %c0_i32, %arg0 : i32, i32
  }
  func.func @transform_1(%arg0: i32) -> (i32, i32) {
    %c0_i32 = arith.constant 0 : i32
    %c0_i32_0 = arith.constant 0 : i32
    %c0_i32_1 = arith.constant 0 : i32
    return %c0_i32, %c0_i32_0 : i32, i32
  }
  func.func @transform_2(%arg0: i32) -> (i32, i32) {
    %c0_i32 = arith.constant 0 : i32
    %c0_i32_0 = arith.constant 0 : i32
    %c0_i32_1 = arith.constant 0 : i32
    return %c0_i32, %c0_i32_0 : i32, i32
  }
  func.func @transform_3(%arg0: i32) -> (i32, i32) {
    %c0_i32 = arith.constant 0 : i32
    %c0_i32_0 = arith.constant 0 : i32
    %c0_i32_1 = arith.constant 0 : i32
    return %c0_i32, %c0_i32_0 : i32, i32
  }
  func.func @transform_4(%arg0: i32) -> (i32, i32) {
    %c0_i32 = arith.constant 0 : i32
    %c0_i32_0 = arith.constant 0 : i32
    %c0_i32_1 = arith.constant 0 : i32
    return %c0_i32, %c0_i32_0 : i32, i32
  }
  func.func @transform_5(%arg0: i32) -> (i32, i32) {
    %c0_i32 = arith.constant 0 : i32
    %c0_i32_0 = arith.constant 0 : i32
    return %c0_i32, %arg0 : i32, i32
  }
}

</mosaic_0001>

<bundles_post_ra>
// kernel: mynet_forward.1
= control target key start
LH: loop header
LB: loop body
LE: loop exit
PB: predicated region body
PF: predicated region fallthrough
CT: control target
= control target key end

     0   :  { %s2590_s20 = smov 0   ;;  %s2802_s0 = inlined_call_operand.vmem [shape: f32[2,1024], index: 0, kind: input, shape index: {}]   ;;  %s2803_s1 = inlined_call_operand.vmem [shape: f32[16,2], index: 1, kind: input, shape index: {}]   ;;  %s2804_s2 = inlined_call_operand.vmem [shape: f32[16,1], index: 2, kind: input, shape index: {}]   ;;  %s2805_s3 = inlined_call_operand.vmem [shape: f32[1,16], index: 3, kind: input, shape index: {}]   ;;  %s2806_s4 = inlined_call_operand.<no memory space> [shape: f32[1,1], index: 4, kind: input, shape index: {}]   ;;  %s2807_s5 = inlined_call_operand.vmem [shape: f32[1,1024], index: 5, kind: output, shape index: {}]  }
   0x1   :  { %10 = sst [smem:[#allocation2]] %s2806_s4 }
   0x2 LB: > { %s2385_s21 = sadd.s32 4294967295, %s2551_s20   ;;  %p2389_p0 = scmp.ge.s32.totalorder %s2551_s20, 1  ;;  %s2551_s20 = sphi %s2590_s20, %s16_s20  }
   0x3   : > { %p189_p1 = scmp.lt.s32.totalorder %s2551_s20, 3 }
   0x5   : > { %p190_p2 = pnand %p2389_p0, %p189_p1 }
   0x6   : > { %s2390_s22 = sshll.u32 (!%p190_p2), %s2385_s21, 2  ;;  %v247_v0 = vlaneseq (!%p190_p2)  ;;  %v227_v1 = vld [vmem:[%s2803_s1] sm:$0xff] (!%p190_p2)  ;;  %v2553_v2 = vmov (!%p190_p2), 1983009808   ;;  %v2554_v4 = vmov (!%p190_p2), 0.0   ;;  %vm260_vm0 = vcmask (!%p190_p2), 15360  }
   0x7   : > { %193 = sbr.rel (%p190_p2) target bundleno = 571 (0x23b), region = 40  ;;  %p217_p3 = scmp.lt.s32.totalorder (!%p190_p2), %s2390_s22, 7  ;;  %v245_v3 = vunpack.c.l.s4 (!%p190_p2), %v2553_v2  ;;  %342 = vmatprep.mubr.f32.mxu0 (!%p190_p2), %v2554_v4  ;;  %856 = vmatprep.mubr.f32.mxu1 (!%p190_p2), %v2554_v4  ;;  %v228_v5 = vld [vmem:[%s2803_s1 + $0x8] sm:$0xff] (!%p190_p2)  ;;  %v230_v6 = vld [vmem:[%s2804_s2] sm:$0xff] (!%p190_p2)  ;;  %v262_v8 = vsel (!%p190_p2), %vm260_vm0, %v227_v1, 0  ;;  %v2555_v10 = vmov (!%p190_p2), 0  }
   0x8   : > { %v2610_v7 = vshrl.u32 (!%p190_p2), %v247_v0, 7  ;;  %v265_v9 = vsel (!%p190_p2), %vm260_vm0, %v228_v5, 0  ;;  %2527 = vset.pattern.permute.xlu0 (!%p190_p2), %v2555_v10  ;;  %v2615_v12 = vand.u32 (!%p190_p2), 4294901760, %v262_v8  ;;  %v231_v14 = vld [vmem:[%s2804_s2 + $0x8] sm:$0xff] (!%p190_p2)  ;;  %vm267_vm1 = vcmask (!%p190_p2), 1041408   ;;  %s1313_s11 = sld [smem:[#allocation2]] (!%p190_p2) }
   0x9   : > { %v246_v11 = vunpack.c.0.s8 (!%p190_p2), %v245_v3  ;;  %v2617_v13 = vand.u32 (!%p190_p2), 4294901760, %v265_v9  ;;  %234 = vperm.xlu0 (!%p190_p2), %2527, %v230_v6   ;;  %v1312_v55 = vld [vmem:[%s2805_s3] sm:$0x1] (!%p190_p2)  ;;  %vm1315_vm2 = vcmask (!%p190_p2), 130048   ;;  %vm2332_vm3 = vcmp.lt.s32.totalorder (!%p190_p2), %v247_v0, 512 }
   0xa   : > { %v2625_v16 = vsub.f32 (!%p190_p2), %v262_v8, %v2615_v12  ;;  %v1317_v56 = vsel (!%p190_p2), %vm1315_vm2, %v1312_v55, 0 }
   0xb   : > { %v249_v15 = vsub.s32 (!%p190_p2), %v246_v11, %v2610_v7  ;;  %v2628_v17 = vsub.f32 (!%p190_p2), %v265_v9, %v2617_v13  ;;  %v2728_v63 = vand.u32 (!%p190_p2), 4294901760, %v1317_v56 }
   0xc   : > { %v2634_v19 = vand.u32 (!%p190_p2), 4294901760, %v2625_v16 }
   0xd   : > { %239 = vperm.xlu0 (!%p190_p2), %2527, %v231_v14   ;;  %v2637_v22 = vand.u32 (!%p190_p2), 4294901760, %v2628_v17  ;;  %v2731_v11 = vsub.f32 (!%p190_p2), %v1317_v56, %v2728_v63 }
   0xe   : > { %s2809_s22 = smov (!%p217_p3, %s2390_s22), 7  ;;  %v346_v23 = vsub.f32 %v2625_v16, %v2634_v19 }
   0xf   : > { %s2391_s30 = sshll.u32 %s2809_s22, 1  ;;  %v357_v31 = vsub.f32 %v2628_v17, %v2637_v22  ;;  %s225_s14 = scalar_lea.vmem %s2807_s5, %s2809_s22 }
  0x10   : > { %s220_s8 = scalar_lea.vmem %s2802_s0, %s2391_s30  ;;  %v347_v34 = vand.u32 4294901760, %v346_v23 }
  0x11   : > { %v229_v18 = vld [vmem:[%s220_s8] sm:$0xff]  ;;  %v358_v41 = vand.u32 4294901760, %v357_v31 }
  0x12   : > { %v250_v20 = vrot.slane %v229_v18, %v249_v15  ;;  %v243_v21 = vcombine.high %v229_v18, %v229_v18 }
  0x14   : > { %v258_v24 = vcombine.high %v250_v20, %v250_v20  ;;  %v268_v25 = vsel %vm267_vm1, %v250_v20, 0  ;;  %v257_v26 = vrot.slane %v243_v21, %v249_v15  ;;  %v2734_v15 = vand.u32 4294901760, %v2731_v11 }
  0x15   : > { %v2642_v27 = vand.u32 4294901760, %v268_v25 }
  0x16   : > { %v270_v28 = vsel %vm267_vm1, %v258_v24, 0  ;;  %v259_v29 = vcombine.high %v257_v26, %v257_v26  ;;  %v272_v30 = vsel %vm267_vm1, %v257_v26, 0 }
  0x17   : > { %v2648_v32 = vand.u32 4294901760, %v270_v28  ;;  %v2651_v33 = vsub.f32 %v268_v25, %v2642_v27  ;;  %v2653_v35 = vand.u32 4294901760, %v272_v30 }
  0x18   : > { %v274_v36 = vsel %vm267_vm1, %v259_v29, 0 }
  0x19   : > { %277 = vmatprep.subr.mxu0 %v2648_v32  ;;  %v2657_v37 = vand.u32 4294901760, %v274_v36  ;;  %v2660_v38 = vsub.f32 %v272_v30, %v2653_v35  ;;  %v366_v39 = vsub.f32 %v270_v28, %v2648_v32  ;;  %v373_v40 = vand.u32 4294901760, %v2651_v33 }
  0x1a   : > { %279 = vmatpush1.msra.mxu0 %v2642_v27 }
  0x1b   : > { %348 = vmatmul.mubr.f32.vlgmr.msra.gmra.mrb[0].mxu0 %v347_v34  ;;  %791 = vmatprep.subr.mxu1 %v2657_v37  ;;  %v367_v42 = vand.u32 4294901760, %v366_v39  ;;  %v374_v43 = vsub.f32 %v2651_v33, %v373_v40  ;;  %v880_v44 = vsub.f32 %v274_v36, %v2657_v37  ;;  %v887_v45 = vand.u32 4294901760, %v2660_v38 }
  0x1c   : > { %793 = vmatpush1.msra.mxu1 %v2653_v35  ;;  %353 = vmatprep.mubr.f32.mxu0 %v2554_v4 }
  0x1d   : > { %862 = vmatmul.mubr.f32.vlgmr.msra.gmra.mrb[0].mxu1 %v347_v34  ;;  %v368_v46 = vsub.f32 %v366_v39, %v367_v42  ;;  %v881_v47 = vand.u32 4294901760, %v880_v44  ;;  %v888_v48 = vsub.f32 %v2660_v38, %v887_v45  ;;  %v375_v49 = vand.u32 4294901760, %v374_v43 }
  0x1e   : > { %867 = vmatprep.mubr.f32.mxu1 %v2554_v4 }
  0x1f   : > { %359 = vmatmul.mubr.f32.gmra.mrb[2].mxu0 %v358_v41  ;;  %v369_v50 = vand.u32 4294901760, %v368_v46  ;;  %v882_v51 = vsub.f32 %v880_v44, %v881_v47  ;;  %v889_v52 = vand.u32 4294901760, %v888_v48 }
  0x20   : > { %439 = vmatprep.mubr.f32.mxu0 %v2554_v4 }
  0x21   : > { %370 = vmatprep.subr.mxu0 %v369_v50  ;;  %873 = vmatmul.mubr.f32.gmra.mrb[2].mxu1 %v358_v41  ;;  %v883_v53 = vand.u32 4294901760, %v882_v51 }
  0x22   : > { %376 = vmatpush1.msra.mxu0 %v375_v49  ;;  %953 = vmatprep.mubr.f32.mxu1 %v2554_v4 }
  0x23   : > { %441 = vmatmul.mubr.f32.vlgmr.msra.gmra.mrb[0].mxu0 %v2615_v12  ;;  %884 = vmatprep.subr.mxu1 %v883_v53 }
  0x24   : > { %890 = vmatpush1.msra.mxu1 %v889_v52  ;;  %446 = vmatprep.mubr.f32.mxu0 %v2554_v4 }
  0x25   : > { %955 = vmatmul.mubr.f32.vlgmr.msra.gmra.mrb[0].mxu1 %v2615_v12  ;;  %456 = vmatprep.subr.mxu0 %v366_v39 }
  0x26   : > { %960 = vmatprep.mubr.f32.mxu1 %v2554_v4  ;;  %459 = vmatpush1.msra.mxu0 %v2651_v33 }
  0x27   : > { %448 = vmatmul.mubr.f32.gmra.mrb[2].mxu0 %v2617_v13  ;;  %970 = vmatprep.subr.mxu1 %v880_v44 }
  0x28   : > { %522 = vmatprep.mubr.f32.mxu0 %v2554_v4  ;;  %973 = vmatpush1.msra.mxu1 %v2660_v38 }
  0x29   : > { %962 = vmatmul.mubr.f32.gmra.mrb[2].mxu1 %v2617_v13  ;;  %540 = vmatprep.subr.mxu0 %v2648_v32 }
  0x2a   : > { %1036 = vmatprep.mubr.f32.mxu1 %v2554_v4  ;;  %1054 = vmatprep.subr.mxu1 %v2657_v37 }
  0x2b   : > { %525 = vmatmul.mubr.f32.vlgmr.msra.gmra.mrb[0].mxu0 %v2625_v16 }
  0x2c   : > { %530 = vmatprep.mubr.f32.mxu0 %v2554_v4  ;;  %542 = vmatpush1.msra.mxu0 %v2642_v27 }
  0x2d   : > { %1039 = vmatmul.mubr.f32.vlgmr.msra.gmra.mrb[0].mxu1 %v2625_v16  ;;  %627 = vmatprep.subr.mxu0 %v367_v42 }
  0x2e   : > { %1044 = vmatprep.mubr.f32.mxu1 %v2554_v4  ;;  %1056 = vmatpush1.msra.mxu1 %v2653_v35 }
  0x2f   : > { %533 = vmatmul.mubr.f32.gmra.mrb[2].mxu0 %v2628_v17  ;;  %1141 = vmatprep.subr.mxu1 %v881_v47 }
  0x30   : > { %605 = vmatprep.mubr.f32.mxu0 %v2554_v4 }
  0x31   : > { %1047 = vmatmul.mubr.f32.gmra.mrb[2].mxu1 %v2628_v17 }
  0x32   : > { %1119 = vmatprep.mubr.f32.mxu1 %v2554_v4 }
  0x33   : > { %609 = vmatmul.mubr.f32.vlgmr.msra.gmra.mrb[0].mxu0 %v2634_v19 }
  0x34   : > { %614 = vmatprep.mubr.f32.mxu0 %v2554_v4  ;;  %631 = vmatpush1.msra.mxu0 %v373_v40 }
  0x35   : > { %1123 = vmatmul.mubr.f32.vlgmr.msra.gmra.mrb[0].mxu1 %v2634_v19  ;;  %710 = vmatprep.subr.mxu0 %v2648_v32  ;;  %v1391_v19 = vsub.f32 %v2731_v11, %v2734_v15 }
  0x36   : > { %1128 = vmatprep.mubr.f32.mxu1 %v2554_v4  ;;  %1145 = vmatpush1.msra.mxu1 %v887_v45 }
  0x37   : > { %618 = vmatmul.mubr.f32.gmra.mrb[2].mxu0 %v2637_v22  ;;  %1224 = vmatprep.subr.mxu1 %v2657_v37  ;;  %v1392_v30 = vand.u32 4294901760, %v1391_v19 }
  0x38   : > { %694 = vmatprep.mubr.f32.mxu0 %v2554_v4 }
  0x39   : > { %1132 = vmatmul.mubr.f32.gmra.mrb[2].mxu1 %v2637_v22 }
  0x3a   : > { %1208 = vmatprep.mubr.f32.mxu1 %v2554_v4 }
  0x3b   : > { %696 = vmatmul.mubr.f32.vlgmr.msra.gmra.mrb[0].mxu0 %v2615_v12 }
  0x3c   : > { %701 = vmatprep.mubr.f32.mxu0 %v2554_v4  ;;  %712 = vmatpush1.msra.mxu0 %v2642_v27 }
  0x3d   : > { %1210 = vmatmul.mubr.f32.vlgmr.msra.gmra.mrb[0].mxu1 %v2615_v12 }
  0x3e   : > { %1215 = vmatprep.mubr.f32.mxu1 %v2554_v4  ;;  %1226 = vmatpush1.msra.mxu1 %v2653_v35 }
  0x3f   : > { %703 = vmatmul.mubr.f32.gmra.mrb[2].mxu0 %v2617_v13 }
  0x40   : > { %775 = vmatprep.mubr.f32.mxu0 %v2554_v4 }
  0x41   : > { %1217 = vmatmul.mubr.f32.gmra.mrb[2].mxu1 %v2617_v13 }
  0x42   : > { %1289 = vmatprep.mubr.f32.mxu1 %v2554_v4 }
  0x43   : > { %777 = vmatmul.mubr.f32.vlgmr.msra.gmra.mrb[0].mxu0 %v2615_v12 }
  0x44   : > { %782 = vmatprep.mubr.f32.mxu0 %v2554_v4 }
  0x45   : > { %1291 = vmatmul.mubr.f32.vlgmr.msra.gmra.mrb[0].mxu1 %v2615_v12 }
  0x46   : > { %1296 = vmatprep.mubr.f32.mxu1 %v2554_v4 }
  0x47   : > { %784 = vmatmul.mubr.f32.gmra.mrb[2].mxu0 %v2617_v13 }
  0x48   : > { %1387 = vmatprep.mubr.f32.mxu0 %v2554_v4 }
  0x49   : > { %1298 = vmatmul.mubr.f32.gmra.mrb[2].mxu1 %v2617_v13 }
  0x4a   : > { %1878 = vmatprep.mubr.f32.mxu1 %v2554_v4 }
  0x88   : > { %v235_v54 = vpop.permute.xlu0 %234 }
  0x8c   : > { %v240_v62 = vpop.permute.xlu0 %239 }
 0x116   : > { %v778_v57 = vpop.f32.mrb[0].mxu0 }
 0x117   : > { %v2443_v58 = vadd.f32 %v778_v57, %v235_v54  ;;  %v780_v59 = vpop.f32.mrb[1].mxu0 }
 0x118   : > { %v2444_v60 = vadd.f32 %v780_v59, %v235_v54  ;;  %v1292_v61 = vpop.f32.mrb[0].mxu1 }
 0x119   : > { %2529 = vtanh.f32 %v2443_v58  ;;  %v2447_v1 = vadd.f32 %v1292_v61, %v235_v54  ;;  %v1294_v2 = vpop.f32.mrb[1].mxu1 }
 0x11a   : > { %2531 = vtanh.f32 %v2444_v60  ;;  %v2448_v3 = vadd.f32 %v1294_v2, %v235_v54  ;;  %v785_v5 = vpop.f32.mrb[2].mxu0 }
 0x11b   : > { %2533 = vtanh.f32 %v2447_v1  ;;  %v2445_v6 = vadd.f32 %v785_v5, %v240_v62  ;;  %v787_v8 = vpop.f32.mrb[3].mxu0 }
 0x11c   : > { %2535 = vtanh.f32 %v2448_v3  ;;  %v2446_v9 = vadd.f32 %v787_v8, %v240_v62  ;;  %v1299_v10 = vpop.f32.mrb[2].mxu1 }
 0x11d   : > { %2537 = vtanh.f32 %v2445_v6  ;;  %v2449_v12 = vadd.f32 %v1299_v10, %v240_v62  ;;  %v1301_v13 = vpop.f32.mrb[3].mxu1 }
 0x11e   : > { %2539 = vtanh.f32 %v2446_v9  ;;  %v2450_v14 = vadd.f32 %v1301_v13, %v240_v62 }
 0x11f   : > { %2541 = vtanh.f32 %v2449_v12 }
 0x120   : > { %2543 = vtanh.f32 %v2450_v14 }
 0x123   : > { %v2530_v16 = vpop.eup %2529 }
 0x124   : > { %v2532_v17 = vpop.eup %2531  ;;  %v1321_v18 = vand.u32 4294901760, %v2530_v16 }
 0x125   : > { %v2534_v20 = vpop.eup %2533  ;;  %v1319_v21 = vand.u32 4294901760, %v2532_v17 }
 0x126   : > { %v2536_v22 = vpop.eup %2535  ;;  %v2738_v23 = vsub.f32 %v2530_v16, %v1321_v18  ;;  %v1812_v24 = vand.u32 4294901760, %v2534_v20 }
 0x127   : > { %v2538_v25 = vpop.eup %2537  ;;  %v2740_v26 = vsub.f32 %v2532_v17, %v1319_v21  ;;  %v1810_v27 = vand.u32 4294901760, %v2536_v22 }
 0x128   : > { %v2540_v28 = vpop.eup %2539  ;;  %v1325_v29 = vand.u32 4294901760, %v2538_v25  ;;  %v1407_v31 = vand.u32 4294901760, %v2738_v23  ;;  %v2743_v35 = vsub.f32 %v2534_v20, %v1812_v24 }
 0x129   : > { %v2542_v32 = vpop.eup %2541  ;;  %v1323_v33 = vand.u32 4294901760, %v2540_v28  ;;  %v1891_v34 = vsub.f32 %v2536_v22, %v1810_v27  ;;  %v1401_v36 = vand.u32 4294901760, %v2740_v26 }
 0x12a   : > { %v2544_v37 = vpop.eup %2543  ;;  %v2746_v38 = vpack.c.bf16 %v1325_v29, %v1321_v18  ;;  %v1418_v39 = vsub.f32 %v2538_v25, %v1325_v29  ;;  %v1816_v40 = vand.u32 4294901760, %v2542_v32  ;;  %v1408_v41 = vsub.f32 %v2738_v23, %v1407_v31 }
 0x12b   : > { %v2749_v42 = vpack.c.bf16 %v1323_v33, %v1319_v21  ;;  %v1412_v43 = vsub.f32 %v2540_v28, %v1323_v33  ;;  %v1814_v44 = vand.u32 4294901760, %v2544_v37  ;;  %v1402_v45 = vsub.f32 %v2740_v26, %v1401_v36 }
 0x12c   : > { %v2752_v46 = vpack.c.bf16 %v1816_v40, %v1812_v24  ;;  %v1909_v47 = vsub.f32 %v2542_v32, %v1816_v40  ;;  %v1409_v48 = vand.u32 4294901760, %v1408_v41  ;;  %v1419_v49 = vand.u32 4294901760, %v1418_v39 }
 0x12d   : > { %2396 = vmatprep.subr.bf16.mxu0 %v2749_v42  ;;  %v2755_v50 = vpack.c.bf16 %v1814_v44, %v1810_v27  ;;  %v1903_v51 = vsub.f32 %v2544_v37, %v1814_v44  ;;  %v1403_v52 = vand.u32 4294901760, %v1402_v45  ;;  %v1413_v53 = vand.u32 4294901760, %v1412_v43 }
 0x12e   : > { %2398 = vmatpush1.bf16.msra.mxu0 %v2746_v38  ;;  %v1420_v54 = vsub.f32 %v1418_v39, %v1419_v49  ;;  %v2403_v55 = vpack.c.bf16 %v1412_v43, %v2740_v26  ;;  %v1892_v56 = vand.u32 4294901760, %v1891_v34  ;;  %v1898_v57 = vand.u32 4294901760, %v2743_v35 }
 0x12f   : > { %2420 = vmatprep.subr.bf16.mxu1 %v2755_v50  ;;  %v1414_v58 = vsub.f32 %v1412_v43, %v1413_v53  ;;  %v1904_v59 = vand.u32 4294901760, %v1903_v51  ;;  %v1910_v60 = vand.u32 4294901760, %v1909_v47  ;;  %v2427_v61 = vpack.c.bf16 %v1903_v51, %v1891_v34 }
 0x130   : > { %2422 = vmatpush1.bf16.msra.mxu1 %v2752_v46  ;;  %v1421_v62 = vand.u32 4294901760, %v1420_v54  ;;  %v1893_v1 = vsub.f32 %v1891_v34, %v1892_v56  ;;  %v1899_v2 = vsub.f32 %v2743_v35, %v1898_v57  ;;  %v2405_v3 = vpack.c.bf16 %v1418_v39, %v2738_v23 }
 0x131   : > { %1393 = vmatmul.mubr.f32.vlgmr.msra.gmra.mrb[4].mxu0 %v1392_v30  ;;  %v1415_v5 = vand.u32 4294901760, %v1414_v58  ;;  %v1905_v6 = vsub.f32 %v1903_v51, %v1904_v59  ;;  %v1911_v8 = vsub.f32 %v1909_v47, %v1910_v60  ;;  %v2429_v9 = vpack.c.bf16 %v1909_v47, %v2743_v35 }
 0x132   : > { %v2401_v10 = vpack.c.bf16 %v1421_v62, %v1409_v48  ;;  %v1894_v12 = vand.u32 4294901760, %v1893_v1  ;;  %1483 = vmatprep.mubr.f32.mxu0 %v2554_v4  ;;  %v1900_v13 = vand.u32 4294901760, %v1899_v2  ;;  %v2411_v14 = vpack.c.bf16 %v1413_v53, %v1401_v36 }
 0x133   : > { %1884 = vmatmul.mubr.f32.vlgmr.msra.gmra.mrb[4].mxu1 %v1392_v30  ;;  %v2399_v16 = vpack.c.bf16 %v1415_v5, %v1403_v52  ;;  %v1906_v17 = vand.u32 4294901760, %v1905_v6  ;;  %v1912_v18 = vand.u32 4294901760, %v1911_v8  ;;  %v2435_v19 = vpack.c.bf16 %v1904_v59, %v1892_v56 }
 0x134   : > { %1974 = vmatprep.mubr.f32.mxu1 %v2554_v4  ;;  %v2413_v20 = vpack.c.bf16 %v1419_v49, %v1407_v31  ;;  %v2437_v21 = vpack.c.bf16 %v1910_v60, %v1898_v57  ;;  %v1314_v24 = vstv %s1313_s11 }
 0x135   : > { %2400 = vmatprep.subr.bf16.mxu0 %v2399_v16  ;;  %v2423_v22 = vpack.c.bf16 %v1906_v17, %v1894_v12  ;;  %v2425_v23 = vpack.c.bf16 %v1912_v18, %v1900_v13 }
 0x136   : > { %2402 = vmatpush1.bf16.msra.mxu0 %v2401_v10 }
 0x137   : > { %2404 = vmatprep.subr.bf16.mxu0 %v2403_v55  ;;  %2424 = vmatprep.subr.bf16.mxu1 %v2423_v22 }
 0x138   : > { %2426 = vmatpush1.bf16.msra.mxu1 %v2425_v23 }
 0x139   : > { %1485 = vmatmul.mubr.f32.vlgmr.msra.gmra.mrb[4].mxu0 %v2728_v63  ;;  %2428 = vmatprep.subr.bf16.mxu1 %v2427_v61 }
 0x13a   : > { %2406 = vmatpush1.bf16.msra.mxu0 %v2405_v3  ;;  %1563 = vmatprep.mubr.f32.mxu0 %v2554_v4 }
 0x13b   : > { %2408 = vmatprep.subr.bf16.mxu0 %v2749_v42  ;;  %1976 = vmatmul.mubr.f32.vlgmr.msra.gmra.mrb[4].mxu1 %v2728_v63 }
 0x13c   : > { %2430 = vmatpush1.bf16.msra.mxu1 %v2429_v9  ;;  %2054 = vmatprep.mubr.f32.mxu1 %v2554_v4 }
 0x13d   : > { %2432 = vmatprep.subr.bf16.mxu1 %v2755_v50 }
 0x141   : > { %1566 = vmatmul.mubr.f32.vlgmr.msra.gmra.mrb[4].mxu0 %v2731_v11 }
 0x142   : > { %2410 = vmatpush1.bf16.msra.mxu0 %v2746_v38  ;;  %1640 = vmatprep.mubr.f32.mxu0 %v2554_v4 }
 0x143   : > { %2412 = vmatprep.subr.bf16.mxu0 %v2411_v14  ;;  %2057 = vmatmul.mubr.f32.vlgmr.msra.gmra.mrb[4].mxu1 %v2731_v11  ;;  %v2556_v11 = vmov 1966171168  }
 0x144   : > { %2434 = vmatpush1.bf16.msra.mxu1 %v2752_v46  ;;  %2131 = vmatprep.mubr.f32.mxu1 %v2554_v4 }
 0x145   : > { %2436 = vmatprep.subr.bf16.mxu1 %v2435_v19 }
 0x149   : > { %1644 = vmatmul.mubr.f32.vlgmr.msra.gmra.mrb[4].mxu0 %v2734_v15 }
 0x14a   : > { %2414 = vmatpush1.bf16.msra.mxu0 %v2413_v20  ;;  %1726 = vmatprep.mubr.f32.mxu0 %v2554_v4 }
 0x14b   : > { %2416 = vmatprep.subr.bf16.mxu0 %v2749_v42  ;;  %2135 = vmatmul.mubr.f32.vlgmr.msra.gmra.mrb[4].mxu1 %v2734_v15  ;;  %v2308_v15 = vunpack.c.l.s4 %v2556_v11 }
 0x14c   : > { %2438 = vmatpush1.bf16.msra.mxu1 %v2437_v21  ;;  %2217 = vmatprep.mubr.f32.mxu1 %v2554_v4 }
 0x14d   : > { %2440 = vmatprep.subr.bf16.mxu1 %v2755_v50  ;;  %v2309_v26 = vunpack.c.0.s8 %v2308_v15 }
 0x151   : > { %1728 = vmatmul.mubr.f32.vlgmr.msra.gmra.mrb[4].mxu0 %v2728_v63 }
 0x152   : > { %2418 = vmatpush1.bf16.msra.mxu0 %v2746_v38  ;;  %1802 = vmatprep.mubr.f32.mxu0 %v2554_v4 }
 0x153   : > { %2219 = vmatmul.mubr.f32.vlgmr.msra.gmra.mrb[4].mxu1 %v2728_v63 }
 0x154   : > { %2442 = vmatpush1.bf16.msra.mxu1 %v2752_v46  ;;  %2293 = vmatprep.mubr.f32.mxu1 %v2554_v4  ;;  %v2312_v4 = vsub.s32 %v2309_v26, %v2610_v7 }
 0x159   : > { %1804 = vmatmul.mubr.f32.vlgmr.msra.gmra.mrb[4].mxu0 %v2728_v63 }
 0x15b   : > { %2295 = vmatmul.mubr.f32.vlgmr.msra.gmra.mrb[4].mxu1 %v2728_v63 }
 0x22c   : > { %v1805_v25 = vpop.f32.mrb[4].mxu0 }
 0x22d   : > { %v2451_v27 = vadd.f32 %v1805_v25, %v1314_v24  ;;  %v1807_v28 = vpop.f32.mrb[5].mxu0 }
 0x22e   : > { %v2452_v29 = vadd.f32 %v1807_v28, %v1314_v24  ;;  %v2296_v30 = vpop.f32.mrb[4].mxu1 }
 0x22f   : > { %v2453_v31 = vadd.f32 %v2296_v30, %v1314_v24  ;;  %v2298_v32 = vpop.f32.mrb[5].mxu1 }
 0x230   : > { %v2305_v33 = vcombine.low %v2451_v27, %v2452_v29  ;;  %v2454_v34 = vadd.f32 %v2298_v32, %v1314_v24 }
 0x232   : > { %v2306_v35 = vcombine.low %v2453_v31, %v2454_v34  ;;  %v2313_v36 = vrot.slane %v2305_v33, %v2312_v4 }
 0x234   : > { %v2320_v63 = vrot.slane %v2306_v35, %v2312_v4 }
 0x236   : > { %v2321_v37 = vcombine.low %v2313_v36, %v2320_v63 }
 0x238   : > { %v2328_v38 = vrot.slane %v2321_v37, %v2312_v4 }
 0x23a   : > { %2334 = vst.msk [vmem:[%s225_s14] sm:$0xf] %vm2332_vm3, %v2328_v38 }
 0x23b PF: > { %s16_s20 = sadd.s32 1, %s2551_s20  }
 0x23c   : > { %p13_p4 = scmp.ge.s32.totalorder %s16_s20, 4  }
 0x23e   :  { %15 = sbr.rel (!%p13_p4) target bundleno = 2 (0x2), region = 70 }

</bundles_post_ra>
